<compile_context>
chip_gen: v7x
topology: tpu7x:2x2x1
jax: 0.10.0
libtpu: 0.0.40
codegen_flags: <defaults>
</compile_context>

<pallas_src>
import functools
import math

import jax
import jax.numpy as jnp
import numpy as np
from jax.experimental import pallas as pl
from jax.experimental.pallas import tpu as pltpu


def _pick_tile(size, max_tile, unit, min_tiles=1):
    """Balanced tile size: a multiple of `unit`, <= max_tile, covering `size`
    with >= min_tiles tiles when possible and never an all-padding tile.
    Returns (tile, padded_size)."""
    max_units = max(1, max_tile // unit)
    units = -(-size // unit)                                   # ceil
    n_tiles = max(-(-units // max_units), min(min_tiles, units))
    tile_units = -(-units // n_tiles)
    tile = tile_units * unit
    return tile, n_tiles * tile


def _memlayer_kernel(x_ref, wt_ref, r_ref, c_ref, o_ref, *, two_inv_d):
    """Grid (i, j, k) = (M, N, K) tiles; K innermost ("arbitrary").

    o_ref is the f32 output block; its block index is constant across k, so it
    stays VMEM-resident for the whole K sweep and doubles as the accumulator.
    """
    k = pl.program_id(2)

    @pl.when(k == 0)
    def _init():
        o_ref[...] = jnp.zeros_like(o_ref)

    # MXU: partial x @ W^T over this K tile, accumulated in f32 in place.
    o_ref[...] += jnp.dot(x_ref[...], wt_ref[...],
                          preferred_element_type=jnp.float32)

    @pl.when(k == pl.num_programs(2) - 1)
    def _finalize():
        out = (o_ref[...] * jnp.float32(two_inv_d)   # (2/D) * x.w
               + r_ref[...]                          # - ||x||^2 / D  (per row)
               + c_ref[...])                         # bias - ||w||^2/D (per col)
        o_ref[...] = out.astype(o_ref.dtype)


def prepare_memlayer_params(weights, bias=None, *, usebias=True,
                            matmul_dtype=None, tn_max=1024, tk_max=2048,
                            min_out_tiles=2):
    """One-time weight-side preparation (hoisted out of the per-call path).

    weights: (size_out, size_in); bias: (size_out,) required iff usebias.
    matmul_dtype: e.g. jnp.bfloat16 to halve streamed weight bytes.
    Returns a dict with the padded, pre-transposed weight matrix, the folded
    per-column constant, and the static tiling decisions.
    """
    size_out, size_in = weights.shape
    if usebias and bias is None:
        raise ValueError("usebias=True requires a bias vector")

    w_stream = weights if matmul_dtype is None else weights.astype(matmul_dtype)

    # Fold ||w||^2 / D and the (optional) bias into one per-column constant,
    # computed from the *same* (possibly cast) weights used in the matmul.
    w_f32 = w_stream.astype(jnp.float32)
    c = -jnp.sum(w_f32 * w_f32, axis=1) / jnp.float32(size_in)
    if usebias:
        c = c + bias.astype(jnp.float32)

    # Tile choices depend only on the weight shape; >= 2 j tiles when possible
    # so both v7x TensorCores are used even for single-M-tile batches.
    tn, n_pad = _pick_tile(size_out, tn_max, 128, min_tiles=min_out_tiles)
    tk, k_pad = _pick_tile(size_in, tk_max, 128)

    wt = jnp.pad(w_stream.T, ((0, k_pad - size_in), (0, n_pad - size_out)))
    c = jnp.pad(c.reshape(1, size_out), ((0, 0), (0, n_pad - size_out)))

    return {"wt": wt, "c": c, "size_in": size_in, "size_out": size_out,
            "tn": tn, "tk": tk}


@functools.partial(jax.jit,
                   static_argnames=("size_in", "size_out", "tn", "tk", "tm_max"))
def _memlayer_forward_impl(x, wt, c, *, size_in, size_out, tn, tk, tm_max):
    B, K = x.shape
    assert K == size_in
    k_pad, n_pad = wt.shape
    mm_dtype = wt.dtype
    itemsize = jnp.dtype(mm_dtype).itemsize

    # Feed the MXU in the streaming dtype; all accumulation stays f32.
    x_mm = x.astype(mm_dtype)

    # Per-row constant -||x||^2 / D, computed once here (not per N tile in the
    # kernel) from the same values the matmul sees.
    x_f32 = x_mm.astype(jnp.float32)
    r = -jnp.sum(x_f32 * x_f32, axis=1, keepdims=True) / jnp.float32(size_in)

    # M tiling: sublane multiple 8 for f32, 16 for bf16; single M tile covers B
    # whenever B <= tm_max (avoids re-streaming W for padding rows).
    sub = 8 * max(1, 4 // itemsize)
    tm, b_pad = _pick_tile(B, tm_max, sub)

    xp = jnp.pad(x_mm, ((0, b_pad - B), (0, k_pad - K)))
    rp = jnp.pad(r, ((0, b_pad - B), (0, 0)))

    ni, nj, nk = b_pad // tm, n_pad // tn, k_pad // tk
    grid = (ni, nj, nk)

    kernel = functools.partial(_memlayer_kernel, two_inv_d=2.0 / size_in)

    # Per-step VMEM (double-buffered inputs + f32 output block) with headroom,
    # clamped so the same defaults stay safe on v7x's 64 MiB physical VMEM.
    step_bytes = (2 * (tm * tk + tk * tn) * itemsize
                  + 2 * (tm + tn) * 4
                  + 2 * tm * tn * 4)
    vmem_limit = int(min(max(2 * step_bytes, 16 * 1024 * 1024),
                         48 * 1024 * 1024))

    out_padded = pl.pallas_call(
        kernel,
        out_shape=jax.ShapeDtypeStruct((b_pad, n_pad), jnp.float32),
        grid_spec=pltpu.PrefetchScalarGridSpec(
            num_scalar_prefetch=0,
            grid=grid,
            in_specs=[
                pl.BlockSpec((tm, tk), lambda i, j, k: (i, k)),   # x
                pl.BlockSpec((tk, tn), lambda i, j, k: (k, j)),   # W^T (streamed)
                pl.BlockSpec((tm, 1), lambda i, j, k: (i, 0)),    # -||x||^2/D
                pl.BlockSpec((1, tn), lambda i, j, k: (0, j)),    # bias - ||w||^2/D
            ],
            out_specs=pl.BlockSpec((tm, tn), lambda i, j, k: (i, j)),
        ),
        compiler_params=pltpu.CompilerParams(
            dimension_semantics=("parallel", "parallel", "arbitrary"),
            vmem_limit_bytes=vmem_limit,
        ),
        cost_estimate=pl.CostEstimate(
            flops=2 * B * size_in * size_out,
            transcendentals=0,
            # Actual streamed bytes under the (i, j, k) grid order:
            # x is re-read once per j tile, W once per i tile.
            bytes_accessed=int(nj * b_pad * k_pad * itemsize
                               + ni * k_pad * n_pad * itemsize
                               + b_pad * n_pad * 4
                               + nj * b_pad * 4 + ni * n_pad * 4),
        ),
    )(xp, wt, rp, c)

    return out_padded[:B, :size_out]


def memlayer_forward(x, params, tm_max=256):
    """x: (B, size_in); params: output of prepare_memlayer_params."""
    return _memlayer_forward_impl(
        x, params["wt"], params["c"],
        size_in=params["size_in"], size_out=params["size_out"],
        tn=params["tn"], tk=params["tk"], tm_max=tm_max)


def init_memlayer_params(key, size_in, size_out):
    # Matches torch's kaiming_uniform_(a=sqrt(5)) for a (size_out, size_in)
    # weight: bound = sqrt(6 / ((1 + a^2) * fan_in)) = 1/sqrt(fan_in),
    # and uniform(-1/sqrt(fan_in), 1/sqrt(fan_in)) for the bias.
    kw, kb = jax.random.split(key)
    bound = 1.0 / math.sqrt(size_in)
    weights = jax.random.uniform(
        kw, (size_out, size_in), jnp.float32, minval=-bound, maxval=bound)
    bias = jax.random.uniform(
        kb, (size_out,), jnp.float32, minval=-bound, maxval=bound)
    return weights, bias


def memlayer_reference(x, weights, bias, usebias=True):
    # Pure-JAX reference mirroring the PyTorch loop semantics.
    diff = x[:, None, :] - weights[None, :, :]          # (B, size_out, size_in)
    out = -jnp.mean(diff * diff, axis=-1)               # (B, size_out)
    if usebias:
        out = out + bias[None, :]
    return out


if __name__ == "__main__":
    key = jax.random.PRNGKey(0)
    kx, kp, kx2, kp2, kx3, kp3 = jax.random.split(key, 6)

    # --- Small shape, exact f32 path (grid (1, 1, 1)).
    B, size_in, size_out = 2, 32, 16
    x = jax.random.normal(kx, (B, size_in), jnp.float32)
    weights, bias = init_memlayer_params(kp, size_in, size_out)

    params = prepare_memlayer_params(weights, bias, usebias=True)
    out = jax.block_until_ready(memlayer_forward(x, params))
    ref = memlayer_reference(x, weights, bias, usebias=True)
    np.testing.assert_allclose(np.asarray(out), np.asarray(ref),
                               rtol=1e-5, atol=1e-5)

    params_nb = prepare_memlayer_params(weights, usebias=False)
    out_nb = jax.block_until_ready(memlayer_forward(x, params_nb))
    ref_nb = memlayer_reference(x, weights, bias, usebias=False)
    np.testing.assert_allclose(np.asarray(out_nb), np.asarray(ref_nb),
                               rtol=1e-5, atol=1e-5)

    # --- Larger shape exercising the full (M, N, K) = (3, 3, 3) grid with
    #     padding remainders along every axis and K-axis output accumulation.
    B2, size_in2, size_out2 = 48, 1280, 640
    x_big = jax.random.normal(kx2, (B2, size_in2), jnp.float32)
    w_big, b_big = init_memlayer_params(kp2, size_in2, size_out2)
    params_big = prepare_memlayer_params(w_big, b_big, usebias=True,
                                         tn_max=256, tk_max=512)
    out_big = jax.block_until_ready(memlayer_forward(x_big, params_big,
                                                     tm_max=16))
    ref_big = memlayer_reference(x_big, w_big, b_big, usebias=True)
    np.testing.assert_allclose(np.asarray(out_big), np.asarray(ref_big),
                               rtol=1e-4, atol=1e-4)

    # --- bf16-streamed weights (halves weight HBM bytes). The reference uses
    #     the same bf16-cast operands so the comparison isolates kernel error.
    B3, size_in3, size_out3 = 16, 256, 384
    x3 = jax.random.normal(kx3, (B3, size_in3), jnp.float32)
    w3, b3 = init_memlayer_params(kp3, size_in3, size_out3)
    params_bf16 = prepare_memlayer_params(w3, b3, usebias=True,
                                          matmul_dtype=jnp.bfloat16)
    out_bf16 = jax.block_until_ready(memlayer_forward(x3, params_bf16))
    x3_b = x3.astype(jnp.bfloat16).astype(jnp.float32)
    w3_b = w3.astype(jnp.bfloat16).astype(jnp.float32)
    ref_bf16 = memlayer_reference(x3_b, w3_b, b3, usebias=True)
    np.testing.assert_allclose(np.asarray(out_bf16), np.asarray(ref_bf16),
                               rtol=2e-3, atol=2e-3)

    print("KERNEL_OK")
</pallas_src>

<mosaic_0001>
module attributes {stable_mosaic.version = 11 : i64} {
  func.func @_memlayer_kernel(%arg0: i32, %arg1: i32, %arg2: i32, %arg3: memref<8x128xf32, #tpu.memory_space<vmem>>, %arg4: memref<128x128xf32, #tpu.memory_space<vmem>>, %arg5: memref<8x1xf32, #tpu.memory_space<vmem>>, %arg6: memref<1x128xf32, #tpu.memory_space<vmem>>, %arg7: memref<8x128xf32, #tpu.memory_space<vmem>>) attributes {dimension_semantics = [#tpu.dimension_semantics<parallel>, #tpu.dimension_semantics<parallel>, #tpu.dimension_semantics<arbitrary>], iteration_bounds = array<i64: 1, 1, 1>, scalar_prefetch = 0 : i64, scratch_operands = 0 : i64, tpu.core_type = #tpu.core_type<tc>, window_params = [{transform_indices = @transform_0, window_bounds = array<i64: 8, 128>}, {transform_indices = @transform_1, window_bounds = array<i64: 128, 128>}, {transform_indices = @transform_2, window_bounds = array<i64: 8, 1>}, {transform_indices = @transform_3, window_bounds = array<i64: 1, 128>}, {transform_indices = @transform_4, window_bounds = array<i64: 8, 128>}]} {
    %c0_i32 = arith.constant 0 : i32
    %0 = arith.cmpi eq, %arg2, %c0_i32 : i32
    %1 = arith.extui %0 : i1 to i32
    %c0_i32_0 = arith.constant 0 : i32
    %2 = arith.cmpi ne, %1, %c0_i32_0 : i32
    scf.if %2 {
      %cst_10 = arith.constant 0.000000e+00 : f32
      %12 = vector.broadcast %cst_10 : f32 to vector<8x128xf32>
      %c0_11 = arith.constant 0 : index
      %c0_12 = arith.constant 0 : index
      %13 = vector.load %arg7[%c0_11, %c0_12] : memref<8x128xf32, #tpu.memory_space<vmem>>, vector<8x128xf32>
      tpu.vector_store %arg7[%c0_11, %c0_12], %12 {strides = array<i32>} : memref<8x128xf32, #tpu.memory_space<vmem>>, vector<8x128xf32>,
    } else {
    }
    %c0 = arith.constant 0 : index
    %c0_1 = arith.constant 0 : index
    %3 = vector.load %arg7[%c0, %c0_1] : memref<8x128xf32, #tpu.memory_space<vmem>>, vector<8x128xf32>
    %c0_2 = arith.constant 0 : index
    %c0_3 = arith.constant 0 : index
    %4 = vector.load %arg3[%c0_2, %c0_3] : memref<8x128xf32, #tpu.memory_space<vmem>>, vector<8x128xf32>
    %c0_4 = arith.constant 0 : index
    %c0_5 = arith.constant 0 : index
    %5 = vector.load %arg4[%c0_4, %c0_5] : memref<128x128xf32, #tpu.memory_space<vmem>>, vector<128x128xf32>
    %cst = arith.constant dense<0.000000e+00> : vector<8x128xf32>
    %6 = tpu.matmul %4, %5, %cst {dimension_numbers = #tpu.dot_dimension_numbers<[1], [0], [0], [1], [0, 0, 1, 1], [], []>} : vector<8x128xf32>, vector<128x128xf32>, vector<8x128xf32> -> vector<8x128xf32>
    %7 = arith.addf %3, %6 : vector<8x128xf32>
    %c0_6 = arith.constant 0 : index
    %c0_7 = arith.constant 0 : index
    %8 = vector.load %arg7[%c0_6, %c0_7] : memref<8x128xf32, #tpu.memory_space<vmem>>, vector<8x128xf32>
    tpu.vector_store %arg7[%c0_6, %c0_7], %7 {strides = array<i32>} : memref<8x128xf32, #tpu.memory_space<vmem>>, vector<8x128xf32>,
    %c0_i32_8 = arith.constant 0 : i32
    %9 = arith.cmpi eq, %arg2, %c0_i32_8 : i32
    %10 = arith.extui %9 : i1 to i32
    %c0_i32_9 = arith.constant 0 : i32
    %11 = arith.cmpi ne, %10, %c0_i32_9 : i32
    scf.if %11 {
      %c0_10 = arith.constant 0 : index
      %c0_11 = arith.constant 0 : index
      %12 = vector.load %arg7[%c0_10, %c0_11] : memref<8x128xf32, #tpu.memory_space<vmem>>, vector<8x128xf32>
      %cst_12 = arith.constant 6.250000e-02 : f32
      %13 = vector.broadcast %cst_12 : f32 to vector<8x128xf32>
      %14 = arith.mulf %12, %13 : vector<8x128xf32>
      %c0_13 = arith.constant 0 : index
      %c0_14 = arith.constant 0 : index
      %15 = vector.load %arg5[%c0_13, %c0_14] : memref<8x1xf32, #tpu.memory_space<vmem>>, vector<8x1xf32>
      %16 = vector.broadcast %15 : vector<8x1xf32> to vector<8x128xf32>
      %17 = arith.addf %14, %16 : vector<8x128xf32>
      %c0_15 = arith.constant 0 : index
      %c0_16 = arith.constant 0 : index
      %18 = vector.load %arg6[%c0_15, %c0_16] : memref<1x128xf32, #tpu.memory_space<vmem>>, vector<1x128xf32>
      %19 = vector.broadcast %18 : vector<1x128xf32> to vector<8x128xf32>
      %20 = arith.addf %17, %19 : vector<8x128xf32>
      %c0_17 = arith.constant 0 : index
      %c0_18 = arith.constant 0 : index
      %21 = vector.load %arg7[%c0_17, %c0_18] : memref<8x128xf32, #tpu.memory_space<vmem>>, vector<8x128xf32>
      tpu.vector_store %arg7[%c0_17, %c0_18], %20 {strides = array<i32>} : memref<8x128xf32, #tpu.memory_space<vmem>>, vector<8x128xf32>,
    } else {
    }
    return
  }
  func.func @transform_0(%arg0: i32, %arg1: i32, %arg2: i32) -> (i32, i32) {
    %c0_i32 = arith.constant 0 : i32
    return %arg0, %arg2 : i32, i32
  }
  func.func @transform_1(%arg0: i32, %arg1: i32, %arg2: i32) -> (i32, i32) {
    %c0_i32 = arith.constant 0 : i32
    return %arg2, %arg1 : i32, i32
  }
  func.func @transform_2(%arg0: i32, %arg1: i32, %arg2: i32) -> (i32, i32) {
    %c0_i32 = arith.constant 0 : i32
    %c0_i32_0 = arith.constant 0 : i32
    return %arg0, %c0_i32 : i32, i32
  }
  func.func @transform_3(%arg0: i32, %arg1: i32, %arg2: i32) -> (i32, i32) {
    %c0_i32 = arith.constant 0 : i32
    %c0_i32_0 = arith.constant 0 : i32
    return %c0_i32, %arg1 : i32, i32
  }
  func.func @transform_4(%arg0: i32, %arg1: i32, %arg2: i32) -> (i32, i32) {
    %c0_i32 = arith.constant 0 : i32
    return %arg0, %arg1 : i32, i32
  }
}

</mosaic_0001>

<bundles_post_ra>
// kernel: _memlayer_forward_impl.1
= control target key start
LH: loop header
LB: loop body
LE: loop exit
PB: predicated region body
PF: predicated region fallthrough
CT: control target
= control target key end

     0   :  { %9 = vsyncpa [#allocation3], 0  ;;  %s261_s15 = smov [#allocation2]   ;;  %s317_s0 = inlined_call_operand.vmem [shape: f32[8,128], index: 0, kind: input, shape index: {}]   ;;  %s318_s1 = inlined_call_operand.hbm [shape: f32[128,128], index: 1, kind: input, shape index: {}]   ;;  %s319_s2 = inlined_call_operand.vmem [shape: f32[8,1], index: 2, kind: input, shape index: {}]   ;;  %s320_s3 = inlined_call_operand.vmem [shape: f32[1,128], index: 3, kind: input, shape index: {}]   ;;  %s321_s4 = inlined_call_operand.vmem [shape: f32[8,128], index: 4, kind: output, shape index: {}]  }
   0x1   :  { %s17_s16 = sshll.u32 %s261_s15, 4  ;;  %s237_s19 = scalar_lea.hbm %s318_s1, 2048  ;;  %s18_s16 = int_to_ptr.vmem [resolvable:$true] %s17_s16 }
   0x2   :  { %p238_p0 = scmp.ne.s32.totalorder %s318_s1, %s237_s19  ;;  %p241_p1 = scmp.lt.u32.totalorder %s237_s19, %s318_s1 }
   0x4   :  { %p243_p2 = pnand %p241_p1, %p238_p0 }
   0x6   :  { %246 = shalt.err (!%p243_p2)
}
   0x7   :  { %s247_s24 = scalar_lea.vmem %s18_s16, 2048  ;;  %p252_p4 = scmp.lt.s32.totalorder %s18_s16, %s18_s16 }
   0x8   :  { %p248_p3 = scmp.ne.s32.totalorder %s18_s16, %s247_s24  ;;  %p253_p5 = scmp.lt.s32.totalorder %s247_s24, %s247_s24 }
   0xa   :  { %p254_p6 = por %p253_p5, %p252_p4 }
   0xc   :  { %p255_p7 = pnand %p254_p6, %p248_p3 }
   0xe   :  { %258 = shalt.err (!%p255_p7)
}
   0xf   :  { %s262_s25 = smov 128   ;;  %s263_s26 = smov 8  }
  0x10   :  { %23 = dma.hbm_to_vmem [thread:$0]  %s318_s1, 2048, %s18_s16, [#allocation3], %s262_s25, %s262_s25, %s263_s26  }
  0x11   :  { %259 = dma.done.wait [#allocation3], 2048  }
  0x12   :  { %260 = vsyncadd [#allocation3], 4294965248  ;;  %v264_v0 = vmov 0.0|0.0   ;;  %vm265_vm0 = vmmov 0   ;;  %v266_v1 = vmov 0.0   ;;  %v267_v2 = vmov 0  }
  0x13   :  { %205 = vmatprep.subr.bf16.mxu0 %v264_v0  ;;  %202 = vmatprep.mubr.msk.f32.mxu0 %vm265_vm0, %v266_v1  ;;  %v38_v3 = vld [vmem:[#allocation2] sm:$0xff]  ;;  %v39_v4 = vld [vmem:[#allocation2 + $0x8] sm:$0xff]  ;;  %v40_v5 = vld [vmem:[#allocation2 + $0x10] sm:$0xff] }
  0x14   :  { %236 = vset.pattern.permute.xlu0 %v267_v2  ;;  %v206_v6 = vpack.c.bf16 %v39_v4, %v38_v3  ;;  %v41_v7 = vld [vmem:[#allocation2 + $0x18] sm:$0xff]  ;;  %v42_v9 = vld [vmem:[#allocation2 + $0x20] sm:$0xff]  ;;  %v43_v10 = vld [vmem:[#allocation2 + $0x28] sm:$0xff] }
  0x15   :  { %v209_v8 = vpack.c.bf16 %v41_v7, %v40_v5  ;;  %v131_v11 = vld [vmem:[%s319_s2] sm:$0xff]  ;;  %v212_v12 = vpack.c.bf16 %v43_v10, %v42_v9  ;;  %v44_v13 = vld [vmem:[#allocation2 + $0x30] sm:$0xff]  ;;  %v45_v14 = vld [vmem:[#allocation2 + $0x38] sm:$0xff] }
  0x16   :  { %207 = vmatpush3.bf16.msra.mxu0 %v206_v6  ;;  %134 = vperm.xlu0 %236, %v131_v11   ;;  %v215_v15 = vpack.c.bf16 %v45_v14, %v44_v13  ;;  %v46_v16 = vld [vmem:[#allocation2 + $0x40] sm:$0xff]  ;;  %v47_v17 = vld [vmem:[#allocation2 + $0x48] sm:$0xff]  ;;  %v48_v19 = vld [vmem:[#allocation2 + $0x50] sm:$0xff] }
  0x17   :  { %208 = vmatprep.subr.bf16.mxu0 %v264_v0  ;;  %v218_v18 = vpack.c.bf16 %v47_v17, %v46_v16  ;;  %v49_v20 = vld [vmem:[#allocation2 + $0x58] sm:$0xff]  ;;  %v50_v22 = vld [vmem:[#allocation2 + $0x60] sm:$0xff]  ;;  %v51_v23 = vld [vmem:[#allocation2 + $0x68] sm:$0xff] }
  0x18   :  { %v221_v21 = vpack.c.bf16 %v49_v20, %v48_v19  ;;  %v224_v24 = vpack.c.bf16 %v51_v23, %v50_v22  ;;  %v52_v25 = vld [vmem:[#allocation2 + $0x70] sm:$0xff]  ;;  %v53_v26 = vld [vmem:[#allocation2 + $0x78] sm:$0xff]  ;;  %v37_v28 = vld [vmem:[%s317_s0] sm:$0xff] }
  0x19   :  { %v227_v27 = vpack.c.bf16 %v53_v26, %v52_v25  ;;  %v152_v33 = vld [vmem:[%s320_s3] ss:$0 sm:$0xff] }
  0x1a   :  { %210 = vmatpush3.bf16.msra.mxu0 %v209_v8 }
  0x1b   :  { %211 = vmatprep.subr.bf16.mxu0 %v264_v0 }
  0x1e   :  { %213 = vmatpush3.bf16.msra.mxu0 %v212_v12 }
  0x1f   :  { %214 = vmatprep.subr.bf16.mxu0 %v264_v0 }
  0x22   :  { %216 = vmatpush3.bf16.msra.mxu0 %v215_v15 }
  0x23   :  { %217 = vmatprep.subr.bf16.mxu0 %v264_v0 }
  0x26   :  { %219 = vmatpush3.bf16.msra.mxu0 %v218_v18 }
  0x27   :  { %220 = vmatprep.subr.bf16.mxu0 %v264_v0 }
  0x2a   :  { %222 = vmatpush3.bf16.msra.mxu0 %v221_v21 }
  0x2b   :  { %223 = vmatprep.subr.bf16.mxu0 %v264_v0 }
  0x2e   :  { %225 = vmatpush3.bf16.msra.mxu0 %v224_v24 }
  0x2f   :  { %226 = vmatprep.subr.bf16.mxu0 %v264_v0 }
  0x32   :  { %228 = vmatpush3.bf16.msra.mxu0 %v227_v27 }
  0x35   :  { %203 = vmatmul.mubr.f32.vlgmr.msra.gmra.mrb[0].mxu0 %v37_v28 }
  0x95   :  { %v135_v31 = vpop.permute.xlu0 %134 }
 0x108   :  { %v120_v29 = vpop.f32.mrb[0].mxu0 }
 0x109   :  { %v204_v30 = vpop.f32.mrb[1].mxu0  ;;  %v130_v32 = vmul.f32 0.0625, %v120_v29 }
 0x10b   :  { %v137_v34 = vadd.f32 %v135_v31, %v130_v32 }
 0x10d   :  { %v145_v35 = vadd.f32 %v152_v33, %v137_v34 }
 0x10f   :  { %146 = vst [vmem:[%s321_s4] sm:$0xff] %v145_v35 }
 0x110   :  { %151 = vsyncpa [#allocation3], 1 }

</bundles_post_ra>
